<compile_context>
chip_gen: v5e
topology: v5e:2x2
jax: 0.10.0
libtpu: 0.0.40
codegen_flags: <defaults>
</compile_context>

<pallas_src>
import functools

import jax
import jax.numpy as jnp
from jax import lax
from jax.experimental import pallas as pl
from jax.experimental.pallas import tpu as pltpu


# --------------------------------------------------------------------------- #
# Kernel
# --------------------------------------------------------------------------- #
def _temporal_block_kernel(x_ref, w1_ref, b1_ref, w2_ref, b2_ref, *rest,
                           kernel_size, dilation, pad, t_tile,
                           has_downsample, use_halo, roll_mode, compute_dtype):
    """One (batch-element, time-tile) grid step.

    x_ref : (1, C_in, T_TILE)            current input tile
    w1_ref: (K, C_out, C_in)  w2_ref: (K, C_out, C_out)   per-tap weight slabs
    b*_ref: (C_out, 1) f32    [wd_ref: (C_out, C_in), bd_ref: (C_out, 1)]
    o_ref : (1, C_out, T_TILE)
    xprev/hprev (VMEM scratch, only when use_halo): previous x / h1 tile, i.e.
    the causal receptive-field halo carried across time tiles.
    """
    idx = 0
    if has_downsample:
        wd_ref, bd_ref = rest[0], rest[1]
        idx = 2
    else:
        wd_ref = bd_ref = None
    o_ref = rest[idx]
    xprev_ref = hprev_ref = None
    if use_halo:
        xprev_ref, hprev_ref = rest[idx + 1], rest[idx + 2]

    ti = pl.program_id(1)

    # Zero the halo at the first time tile of each batch element's sweep.
    # NOTE: the halo carry relies on (a) the time axis being the innermost,
    # sequentially iterated ("arbitrary") grid axis and (b) VMEM scratch
    # persisting across grid steps on the same core.  Do not reorder the grid
    # or mark the time axis "parallel" without removing this carry.
    if use_halo:
        @pl.when(ti == 0)
        def _zero_halo():
            xprev_ref[...] = jnp.zeros_like(xprev_ref)
            hprev_ref[...] = jnp.zeros_like(hprev_ref)

    x_raw = x_ref[0]                                  # (C_in, T_TILE), input dtype
    x_t = x_raw.astype(compute_dtype)

    def causal_conv(cur, prev, w_ref, b_ref):
        """Dilated causal conv as K accumulated MXU matmuls (no im2col scratch).

        Tap k's operand is `cur` shifted right by s = (K-1-k)*dilation lanes,
        with the first s lanes taken from the halo `prev` (zeros at ti == 0).
        The shift is built in-register: XLU roll + VPU select for lane-aligned
        tiles, a lane concatenation otherwise.  No staging/col stores.
        """
        lane = None
        if roll_mode is not None:
            lane = lax.broadcasted_iota(jnp.int32, cur.shape, 1)
        acc = None
        for k in range(kernel_size):
            s = pad - k * dilation
            if s == 0:                                # last tap: unshifted tile
                op = cur
            elif s >= t_tile:                         # whole operand is halo
                op = prev
            elif roll_mode is not None:
                merged = jnp.where(lane >= t_tile - s, prev, cur)
                shift = s if roll_mode == "np" else t_tile - s
                op = pltpu.roll(merged, shift=shift, axis=1)
            else:                                     # small / unaligned tiles
                op = jnp.concatenate(
                    [prev[:, t_tile - s:], cur[:, :t_tile - s]], axis=1)
            p = jnp.dot(w_ref[k], op, preferred_element_type=jnp.float32)
            acc = p if acc is None else acc + p       # K-1 cheap f32 VPU adds
        return jnp.maximum(acc + b_ref[...], 0.0)     # bias + ReLU in f32

    # ---- conv1 -> Chomp1d -> ReLU (dropout1 = identity in eval mode) --------
    prev_x = xprev_ref[...] if use_halo else jnp.zeros_like(x_t)
    h1 = causal_conv(x_t, prev_x, w1_ref, b1_ref)
    h1c = h1.astype(compute_dtype)
    # TODO(synk): training-mode dropout (pltpu.prng_*) not implemented.

    # ---- conv2 -> Chomp1d -> ReLU (dropout2 = identity in eval mode) --------
    prev_h = hprev_ref[...] if use_halo else jnp.zeros_like(h1c)
    h2 = causal_conv(h1c, prev_h, w2_ref, b2_ref)

    # ---- residual + final ReLU ----------------------------------------------
    if has_downsample:
        # NOTE: with a bf16 compute_dtype the 1x1 downsample consumes bf16 x
        # (consistent with the conv operands); the identity path below adds the
        # original-precision x.
        res = jnp.dot(wd_ref[...], x_t,
                      preferred_element_type=jnp.float32) + bd_ref[...]
    else:
        res = x_raw.astype(jnp.float32)
    o_ref[0] = jnp.maximum(h2 + res, 0.0).astype(o_ref.dtype)

    # ---- carry the receptive-field halo to the next time tile ---------------
    # (Harmless on the last tile of a sweep: the next batch element re-zeroes.)
    if use_halo:
        xprev_ref[...] = x_t
        hprev_ref[...] = h1c


# --------------------------------------------------------------------------- #
# Generation-aware sizing helpers
# --------------------------------------------------------------------------- #
def _tpu_vmem_limit_bytes():
    """~3/4 of per-core VMEM, capped at 96 MiB (v7x 64 MiB -> 48 MiB;
    v5e/v6e 128 MiB -> 96 MiB).  Conservative fallback if the query fails."""
    cap = 0
    try:
        cap = int(getattr(pltpu.get_tpu_info(), "vmem_capacity_bytes", 0) or 0)
    except Exception:
        cap = 0
    if cap <= 0:
        cap = 64 * 1024 * 1024
    return min((cap * 3) // 4, 96 * 1024 * 1024)


def _pick_t_tile(T, pad, c_in, c_out, x_bytes, cdt_bytes, budget):
    """Largest time tile that divides T, is a multiple of 128 (or T itself),
    covers the causal halo, and keeps the per-step VMEM footprint --
    double-buffered x/out blocks + halo scratch + f32 intermediates -- within
    `budget` (review: the f32 h1/h2/tap temporaries must be counted on v7x)."""
    def step_bytes(t):
        io = 2 * t * (c_in + c_out) * x_bytes           # pipelined in/out blocks
        halo = t * (c_in + c_out) * cdt_bytes           # persistent halo scratch
        interm = t * (4 * c_out + 2 * c_in) * 4         # f32 temporaries
        return io + halo + interm

    if T <= 128 or T % 128 != 0:
        return T
    best = 128
    for t in range(128, T + 1, 128):
        if T % t == 0 and t >= pad and step_bytes(t) <= budget:
            best = t
    return best


@functools.lru_cache(maxsize=1)
def _roll_matches_numpy():
    """Probe pltpu.roll's rotation direction once.

    Returns True if it matches np.roll (element i -> i+shift), False if it is
    the opposite convention, None if roll cannot be lowered (use the concat
    fallback).  Probing keeps the fast path correct regardless of convention.
    """
    def _kernel(o_ref):
        idx = lax.broadcasted_iota(jnp.int32, (8, 128), 1)
        o_ref[...] = pltpu.roll(idx, shift=1, axis=1)

    try:
        out = pl.pallas_call(
            _kernel, out_shape=jax.ShapeDtypeStruct((8, 128), jnp.int32))()
        out = jax.block_until_ready(out)
        return bool(int(out[0, 1]) == 0)
    except Exception:
        return None


# --------------------------------------------------------------------------- #
# Wrapper
# --------------------------------------------------------------------------- #
def temporal_block(x, params, *, kernel_size, dilation,
                   compute_dtype=jnp.float32, t_tile=None):
    """x: (B, C_in, T) -> (B, C_out, T).  Matches PyTorch TemporalBlock (eval)."""
    B, c_in, T = x.shape
    c_out = params["w1"].shape[0]
    pad = dilation * (kernel_size - 1)            # Conv1d padding == Chomp1d size
    has_downsample = "wd" in params
    cdt = jnp.dtype(compute_dtype)

    vmem_limit = _tpu_vmem_limit_bytes()

    # Per-tap weight slabs: PyTorch (C_out, C_in, K) -> (K, C_out, C_in) so the
    # kernel indexes a clean leading axis (no misaligned weight slicing).
    w1 = jnp.transpose(params["w1"], (2, 0, 1)).astype(compute_dtype)
    w2 = jnp.transpose(params["w2"], (2, 0, 1)).astype(compute_dtype)
    b1 = params["b1"].reshape(c_out, 1).astype(jnp.float32)
    b2 = params["b2"].reshape(c_out, 1).astype(jnp.float32)
    w_bytes = (w1.size + w2.size) * cdt.itemsize

    if t_tile is None:
        t_tile = _pick_t_tile(T, pad, c_in, c_out, x.dtype.itemsize, cdt.itemsize,
                              budget=max(vmem_limit - w_bytes - (2 << 20), 4 << 20))
    if T % t_tile != 0:
        raise ValueError("t_tile must divide T")
    if t_tile != T and t_tile % 128 != 0:
        raise ValueError("t_tile must be a multiple of 128 (or the full T)")
    if pad > t_tile:
        raise ValueError("time tile must cover the causal receptive-field halo")
    nt = T // t_tile
    use_halo = pad > 0 and nt > 1

    # In-register tap shifts: use the XLU roll when the lane dim is aligned,
    # with the rotation direction probed once; otherwise a lane concatenation.
    roll_mode = None
    if pad > 0 and t_tile % 128 == 0:
        probe = _roll_matches_numpy()
        if probe is not None:
            roll_mode = "np" if probe else "rev"

    operands = [x, w1, b1, w2, b2]
    in_specs = [
        pl.BlockSpec((1, c_in, t_tile), lambda b, t: (b, 0, t)),
        pl.BlockSpec((kernel_size, c_out, c_in), lambda b, t: (0, 0, 0)),
        pl.BlockSpec((c_out, 1), lambda b, t: (0, 0)),
        pl.BlockSpec((kernel_size, c_out, c_out), lambda b, t: (0, 0, 0)),
        pl.BlockSpec((c_out, 1), lambda b, t: (0, 0)),
    ]
    if has_downsample:
        wd = params["wd"].reshape(c_out, c_in).astype(compute_dtype)
        bd = params["bd"].reshape(c_out, 1).astype(jnp.float32)
        operands += [wd, bd]
        in_specs += [
            pl.BlockSpec((c_out, c_in), lambda b, t: (0, 0)),
            pl.BlockSpec((c_out, 1), lambda b, t: (0, 0)),
        ]

    scratch_shapes = []
    if use_halo:
        # Full-tile-wide halo carries: one aligned full-width store per step is
        # cheaper than extracting a lane-misaligned pad-wide slice; the extra
        # VMEM is accounted for in _pick_t_tile.
        scratch_shapes = [pltpu.VMEM((c_in, t_tile), compute_dtype),
                          pltpu.VMEM((c_out, t_tile), compute_dtype)]

    kernel = functools.partial(
        _temporal_block_kernel,
        kernel_size=kernel_size, dilation=dilation, pad=pad, t_tile=t_tile,
        has_downsample=has_downsample, use_halo=use_halo, roll_mode=roll_mode,
        compute_dtype=compute_dtype)

    grid_spec = pltpu.PrefetchScalarGridSpec(
        num_scalar_prefetch=0,
        grid=(B, nt),                    # batch outer (parallel), time inner
        in_specs=in_specs,
        out_specs=pl.BlockSpec((1, c_out, t_tile), lambda b, t: (b, 0, t)),
        scratch_shapes=scratch_shapes,
    )

    return pl.pallas_call(
        kernel,
        out_shape=jax.ShapeDtypeStruct((B, c_out, T), x.dtype),
        grid_spec=grid_spec,
        compiler_params=pltpu.CompilerParams(
            # Batch axis "parallel" (B >= 2 blocks -> both v7x TCs get work);
            # the time axis must stay innermost + "arbitrary" while the halo is
            # carried across tiles in VMEM scratch.
            dimension_semantics=("parallel",
                                 "arbitrary" if use_halo else "parallel"),
            vmem_limit_bytes=vmem_limit),
    )(*operands)


# --------------------------------------------------------------------------- #
# Parameters, reference, tests
# --------------------------------------------------------------------------- #
def init_params(key, c_in, c_out, kernel_size):
    """Deterministic synthetic parameters in PyTorch layouts."""
    k1, k2, k3, k4, k5, k6 = jax.random.split(key, 6)
    s = 0.2
    params = {
        "w1": s * jax.random.normal(k1, (c_out, c_in, kernel_size), jnp.float32),
        "b1": s * jax.random.normal(k2, (c_out,), jnp.float32),
        "w2": s * jax.random.normal(k3, (c_out, c_out, kernel_size), jnp.float32),
        "b2": s * jax.random.normal(k4, (c_out,), jnp.float32),
    }
    if c_in != c_out:   # PyTorch: downsample only when channel counts differ
        params["wd"] = s * jax.random.normal(k5, (c_out, c_in), jnp.float32)
        params["bd"] = s * jax.random.normal(k6, (c_out,), jnp.float32)
    return params


def reference(x, params, *, kernel_size, dilation):
    """Pure-JAX reference matching PyTorch TemporalBlock (eval mode)."""
    B, c_in, T = x.shape
    pad = dilation * (kernel_size - 1)
    hp = jax.lax.Precision.HIGHEST

    def causal_conv(inp, w, b):
        inp_p = jnp.pad(inp, ((0, 0), (0, 0), (pad, 0)))
        out = sum(jnp.einsum("oc,bct->bot", w[:, :, k],
                             inp_p[:, :, k * dilation: k * dilation + T],
                             precision=hp)
                  for k in range(kernel_size))
        return out + b[None, :, None]

    h1 = jax.nn.relu(causal_conv(x, params["w1"], params["b1"]))
    h2 = jax.nn.relu(causal_conv(h1, params["w2"], params["b2"]))
    if "wd" in params:
        res = jnp.einsum("oc,bct->bot", params["wd"], x,
                         precision=hp) + params["bd"][None, :, None]
    else:
        res = x
    return jax.nn.relu(h2 + res)


def _run_case(key, *, B, c_in, c_out, T, ksize, dilation,
              compute_dtype, t_tile=None, atol, rtol):
    kx, kp = jax.random.split(key)
    x = jax.random.normal(kx, (B, c_in, T), jnp.float32)
    params = init_params(kp, c_in, c_out, ksize)
    out = temporal_block(x, params, kernel_size=ksize, dilation=dilation,
                         compute_dtype=compute_dtype, t_tile=t_tile)
    out = jax.block_until_ready(out)
    ref = reference(x, params, kernel_size=ksize, dilation=dilation)
    assert out.shape == (B, c_out, T)
    err = float(jnp.max(jnp.abs(out - ref)))
    assert jnp.allclose(out, ref, atol=atol, rtol=rtol), f"mismatch max_err={err}"


if __name__ == "__main__":
    key = jax.random.PRNGKey(0)
    k1, k2, k3, k4 = jax.random.split(key, 4)

    # 1) downsample path (c_in != c_out), f32 MXU path, single time tile.
    _run_case(k1, B=2, c_in=4, c_out=8, T=16, ksize=3, dilation=2,
              compute_dtype=jnp.float32, atol=1e-4, rtol=1e-4)
    # 2) same shapes, bf16 operand path (f32 accumulation + f32 epilogue).
    _run_case(k2, B=2, c_in=4, c_out=8, T=16, ksize=3, dilation=2,
              compute_dtype=jnp.bfloat16, atol=1e-1, rtol=1e-1)
    # 3) identity-residual path (c_in == c_out): residual matmul skipped.
    _run_case(k3, B=2, c_in=8, c_out=8, T=16, ksize=3, dilation=2,
              compute_dtype=jnp.float32, atol=1e-4, rtol=1e-4)
    # 4) multi-time-tile path: roll-based tap shifts + halo carried across tiles.
    _run_case(k4, B=2, c_in=4, c_out=8, T=256, ksize=3, dilation=2,
              compute_dtype=jnp.float32, t_tile=128, atol=1e-4, rtol=1e-4)

    print("KERNEL_OK")
</pallas_src>

<mosaic_0001>
module attributes {stable_mosaic.version = 11 : i64} {
  func.func @_temporal_block_kernel(%arg0: i32, %arg1: i32, %arg2: memref<1x4x16xf32, #tpu.memory_space<vmem>>, %arg3: memref<3x8x4xf32, #tpu.memory_space<vmem>>, %arg4: memref<8x1xf32, #tpu.memory_space<vmem>>, %arg5: memref<3x8x8xf32, #tpu.memory_space<vmem>>, %arg6: memref<8x1xf32, #tpu.memory_space<vmem>>, %arg7: memref<8x4xf32, #tpu.memory_space<vmem>>, %arg8: memref<8x1xf32, #tpu.memory_space<vmem>>, %arg9: memref<1x8x16xf32, #tpu.memory_space<vmem>>) attributes {dimension_semantics = [#tpu.dimension_semantics<parallel>, #tpu.dimension_semantics<parallel>], iteration_bounds = array<i64: 2, 1>, scalar_prefetch = 0 : i64, scratch_operands = 0 : i64, tpu.core_type = #tpu.core_type<tc>, window_params = [{transform_indices = @transform_0, window_bounds = array<i64: 1, 4, 16>}, {pipeline_mode = #tpu.pipeline_mode<synchronous>, transform_indices = @transform_1, window_bounds = array<i64: 3, 8, 4>}, {pipeline_mode = #tpu.pipeline_mode<synchronous>, transform_indices = @transform_2, window_bounds = array<i64: 8, 1>}, {pipeline_mode = #tpu.pipeline_mode<synchronous>, transform_indices = @transform_3, window_bounds = array<i64: 3, 8, 8>}, {pipeline_mode = #tpu.pipeline_mode<synchronous>, transform_indices = @transform_4, window_bounds = array<i64: 8, 1>}, {pipeline_mode = #tpu.pipeline_mode<synchronous>, transform_indices = @transform_5, window_bounds = array<i64: 8, 4>}, {pipeline_mode = #tpu.pipeline_mode<synchronous>, transform_indices = @transform_6, window_bounds = array<i64: 8, 1>}, {transform_indices = @transform_7, window_bounds = array<i64: 1, 8, 16>}]} {
    %c0 = arith.constant 0 : index
    %c0_0 = arith.constant 0 : index
    %c0_1 = arith.constant 0 : index
    %0 = vector.load %arg2[%c0, %c0_0, %c0_1] : memref<1x4x16xf32, #tpu.memory_space<vmem>>, vector<1x4x16xf32>
    %1 = vector.shape_cast %0 : vector<1x4x16xf32> to vector<4x16xf32>
    %cst = arith.constant 0.000000e+00 : f32
    %2 = vector.broadcast %cst : f32 to vector<4x16xf32>
    %3 = vector.extract_strided_slice %2 {offsets = [0, 12], sizes = [4, 4], strides = [1, 1]} : vector<4x16xf32> to vector<4x4xf32>
    %4 = vector.extract_strided_slice %1 {offsets = [0, 0], sizes = [4, 12], strides = [1, 1]} : vector<4x16xf32> to vector<4x12xf32>
    %5 = tpu.concatenate %3, %4 in 1 : vector<4x4xf32>, vector<4x12xf32> -> vector<4x16xf32>
    %c0_2 = arith.constant 0 : index
    %c0_3 = arith.constant 0 : index
    %c0_4 = arith.constant 0 : index
    %6 = vector.load %arg3[%c0_2, %c0_3, %c0_4] : memref<3x8x4xf32, #tpu.memory_space<vmem>>, vector<1x8x4xf32>
    %7 = vector.shape_cast %6 : vector<1x8x4xf32> to vector<8x4xf32>
    %cst_5 = arith.constant dense<0.000000e+00> : vector<8x16xf32>
    %8 = tpu.matmul %7, %5, %cst_5 {dimension_numbers = #tpu.dot_dimension_numbers<[1], [0], [0], [1], [0, 0, 1, 1], [], []>} : vector<8x4xf32>, vector<4x16xf32>, vector<8x16xf32> -> vector<8x16xf32>
    %9 = vector.extract_strided_slice %2 {offsets = [0, 14], sizes = [4, 2], strides = [1, 1]} : vector<4x16xf32> to vector<4x2xf32>
    %10 = vector.extract_strided_slice %1 {offsets = [0, 0], sizes = [4, 14], strides = [1, 1]} : vector<4x16xf32> to vector<4x14xf32>
    %11 = tpu.concatenate %9, %10 in 1 : vector<4x2xf32>, vector<4x14xf32> -> vector<4x16xf32>
    %c1 = arith.constant 1 : index
    %c0_6 = arith.constant 0 : index
    %c0_7 = arith.constant 0 : index
    %12 = vector.load %arg3[%c1, %c0_6, %c0_7] : memref<3x8x4xf32, #tpu.memory_space<vmem>>, vector<1x8x4xf32>
    %13 = vector.shape_cast %12 : vector<1x8x4xf32> to vector<8x4xf32>
    %cst_8 = arith.constant dense<0.000000e+00> : vector<8x16xf32>
    %14 = tpu.matmul %13, %11, %cst_8 {dimension_numbers = #tpu.dot_dimension_numbers<[1], [0], [0], [1], [0, 0, 1, 1], [], []>} : vector<8x4xf32>, vector<4x16xf32>, vector<8x16xf32> -> vector<8x16xf32>
    %15 = arith.addf %8, %14 : vector<8x16xf32>
    %c2 = arith.constant 2 : index
    %c0_9 = arith.constant 0 : index
    %c0_10 = arith.constant 0 : index
    %16 = vector.load %arg3[%c2, %c0_9, %c0_10] : memref<3x8x4xf32, #tpu.memory_space<vmem>>, vector<1x8x4xf32>
    %17 = vector.shape_cast %16 : vector<1x8x4xf32> to vector<8x4xf32>
    %cst_11 = arith.constant dense<0.000000e+00> : vector<8x16xf32>
    %18 = tpu.matmul %17, %1, %cst_11 {dimension_numbers = #tpu.dot_dimension_numbers<[1], [0], [0], [1], [0, 0, 1, 1], [], []>} : vector<8x4xf32>, vector<4x16xf32>, vector<8x16xf32> -> vector<8x16xf32>
    %19 = arith.addf %15, %18 : vector<8x16xf32>
    %c0_12 = arith.constant 0 : index
    %c0_13 = arith.constant 0 : index
    %20 = vector.load %arg4[%c0_12, %c0_13] : memref<8x1xf32, #tpu.memory_space<vmem>>, vector<8x1xf32>
    %21 = vector.broadcast %20 : vector<8x1xf32> to vector<8x16xf32>
    %22 = arith.addf %19, %21 : vector<8x16xf32>
    %cst_14 = arith.constant 0.000000e+00 : f32
    %23 = vector.broadcast %cst_14 : f32 to vector<8x16xf32>
    %24 = arith.maximumf %22, %23 : vector<8x16xf32>
    %cst_15 = arith.constant 0.000000e+00 : f32
    %25 = vector.broadcast %cst_15 : f32 to vector<8x16xf32>
    %26 = vector.extract_strided_slice %25 {offsets = [0, 12], sizes = [8, 4], strides = [1, 1]} : vector<8x16xf32> to vector<8x4xf32>
    %27 = vector.extract_strided_slice %24 {offsets = [0, 0], sizes = [8, 12], strides = [1, 1]} : vector<8x16xf32> to vector<8x12xf32>
    %28 = tpu.concatenate %26, %27 in 1 : vector<8x4xf32>, vector<8x12xf32> -> vector<8x16xf32>
    %c0_16 = arith.constant 0 : index
    %c0_17 = arith.constant 0 : index
    %c0_18 = arith.constant 0 : index
    %29 = vector.load %arg5[%c0_16, %c0_17, %c0_18] : memref<3x8x8xf32, #tpu.memory_space<vmem>>, vector<1x8x8xf32>
    %30 = vector.shape_cast %29 : vector<1x8x8xf32> to vector<8x8xf32>
    %cst_19 = arith.constant dense<0.000000e+00> : vector<8x16xf32>
    %31 = tpu.matmul %30, %28, %cst_19 {dimension_numbers = #tpu.dot_dimension_numbers<[1], [0], [0], [1], [0, 0, 1, 1], [], []>} : vector<8x8xf32>, vector<8x16xf32>, vector<8x16xf32> -> vector<8x16xf32>
    %32 = vector.extract_strided_slice %25 {offsets = [0, 14], sizes = [8, 2], strides = [1, 1]} : vector<8x16xf32> to vector<8x2xf32>
    %33 = vector.extract_strided_slice %24 {offsets = [0, 0], sizes = [8, 14], strides = [1, 1]} : vector<8x16xf32> to vector<8x14xf32>
    %34 = tpu.concatenate %32, %33 in 1 : vector<8x2xf32>, vector<8x14xf32> -> vector<8x16xf32>
    %c1_20 = arith.constant 1 : index
    %c0_21 = arith.constant 0 : index
    %c0_22 = arith.constant 0 : index
    %35 = vector.load %arg5[%c1_20, %c0_21, %c0_22] : memref<3x8x8xf32, #tpu.memory_space<vmem>>, vector<1x8x8xf32>
    %36 = vector.shape_cast %35 : vector<1x8x8xf32> to vector<8x8xf32>
    %cst_23 = arith.constant dense<0.000000e+00> : vector<8x16xf32>
    %37 = tpu.matmul %36, %34, %cst_23 {dimension_numbers = #tpu.dot_dimension_numbers<[1], [0], [0], [1], [0, 0, 1, 1], [], []>} : vector<8x8xf32>, vector<8x16xf32>, vector<8x16xf32> -> vector<8x16xf32>
    %38 = arith.addf %31, %37 : vector<8x16xf32>
    %c2_24 = arith.constant 2 : index
    %c0_25 = arith.constant 0 : index
    %c0_26 = arith.constant 0 : index
    %39 = vector.load %arg5[%c2_24, %c0_25, %c0_26] : memref<3x8x8xf32, #tpu.memory_space<vmem>>, vector<1x8x8xf32>
    %40 = vector.shape_cast %39 : vector<1x8x8xf32> to vector<8x8xf32>
    %cst_27 = arith.constant dense<0.000000e+00> : vector<8x16xf32>
    %41 = tpu.matmul %40, %24, %cst_27 {dimension_numbers = #tpu.dot_dimension_numbers<[1], [0], [0], [1], [0, 0, 1, 1], [], []>} : vector<8x8xf32>, vector<8x16xf32>, vector<8x16xf32> -> vector<8x16xf32>
    %42 = arith.addf %38, %41 : vector<8x16xf32>
    %c0_28 = arith.constant 0 : index
    %c0_29 = arith.constant 0 : index
    %43 = vector.load %arg6[%c0_28, %c0_29] : memref<8x1xf32, #tpu.memory_space<vmem>>, vector<8x1xf32>
    %44 = vector.broadcast %43 : vector<8x1xf32> to vector<8x16xf32>
    %45 = arith.addf %42, %44 : vector<8x16xf32>
    %cst_30 = arith.constant 0.000000e+00 : f32
    %46 = vector.broadcast %cst_30 : f32 to vector<8x16xf32>
    %47 = arith.maximumf %45, %46 : vector<8x16xf32>
    %c0_31 = arith.constant 0 : index
    %c0_32 = arith.constant 0 : index
    %48 = vector.load %arg7[%c0_31, %c0_32] : memref<8x4xf32, #tpu.memory_space<vmem>>, vector<8x4xf32>
    %cst_33 = arith.constant dense<0.000000e+00> : vector<8x16xf32>
    %49 = tpu.matmul %48, %1, %cst_33 {dimension_numbers = #tpu.dot_dimension_numbers<[1], [0], [0], [1], [0, 0, 1, 1], [], []>} : vector<8x4xf32>, vector<4x16xf32>, vector<8x16xf32> -> vector<8x16xf32>
    %c0_34 = arith.constant 0 : index
    %c0_35 = arith.constant 0 : index
    %50 = vector.load %arg8[%c0_34, %c0_35] : memref<8x1xf32, #tpu.memory_space<vmem>>, vector<8x1xf32>
    %51 = vector.broadcast %50 : vector<8x1xf32> to vector<8x16xf32>
    %52 = arith.addf %49, %51 : vector<8x16xf32>
    %53 = arith.addf %47, %52 : vector<8x16xf32>
    %cst_36 = arith.constant 0.000000e+00 : f32
    %54 = vector.broadcast %cst_36 : f32 to vector<8x16xf32>
    %55 = arith.maximumf %53, %54 : vector<8x16xf32>
    %c0_37 = arith.constant 0 : index
    %c0_38 = arith.constant 0 : index
    %c0_39 = arith.constant 0 : index
    %56 = vector.load %arg9[%c0_37, %c0_38, %c0_39] : memref<1x8x16xf32, #tpu.memory_space<vmem>>, vector<1x8x16xf32>
    %57 = vector.shape_cast %56 : vector<1x8x16xf32> to vector<8x16xf32>
    %58 = vector.shape_cast %55 : vector<8x16xf32> to vector<1x8x16xf32>
    tpu.vector_store %arg9[%c0_37, %c0_38, %c0_39], %58 {strides = array<i32>} : memref<1x8x16xf32, #tpu.memory_space<vmem>>, vector<1x8x16xf32>,
    return
  }
  func.func @transform_0(%arg0: i32, %arg1: i32) -> (i32, i32, i32) {
    %c0_i32 = arith.constant 0 : i32
    %c0_i32_0 = arith.constant 0 : i32
    return %arg0, %c0_i32, %arg1 : i32, i32, i32
  }
  func.func @transform_1(%arg0: i32, %arg1: i32) -> (i32, i32, i32) {
    %c0_i32 = arith.constant 0 : i32
    %c0_i32_0 = arith.constant 0 : i32
    %c0_i32_1 = arith.constant 0 : i32
    %c0_i32_2 = arith.constant 0 : i32
    return %c0_i32, %c0_i32_0, %c0_i32_1 : i32, i32, i32
  }
  func.func @transform_2(%arg0: i32, %arg1: i32) -> (i32, i32) {
    %c0_i32 = arith.constant 0 : i32
    %c0_i32_0 = arith.constant 0 : i32
    %c0_i32_1 = arith.constant 0 : i32
    return %c0_i32, %c0_i32_0 : i32, i32
  }
  func.func @transform_3(%arg0: i32, %arg1: i32) -> (i32, i32, i32) {
    %c0_i32 = arith.constant 0 : i32
    %c0_i32_0 = arith.constant 0 : i32
    %c0_i32_1 = arith.constant 0 : i32
    %c0_i32_2 = arith.constant 0 : i32
    return %c0_i32, %c0_i32_0, %c0_i32_1 : i32, i32, i32
  }
  func.func @transform_4(%arg0: i32, %arg1: i32) -> (i32, i32) {
    %c0_i32 = arith.constant 0 : i32
    %c0_i32_0 = arith.constant 0 : i32
    %c0_i32_1 = arith.constant 0 : i32
    return %c0_i32, %c0_i32_0 : i32, i32
  }
  func.func @transform_5(%arg0: i32, %arg1: i32) -> (i32, i32) {
    %c0_i32 = arith.constant 0 : i32
    %c0_i32_0 = arith.constant 0 : i32
    %c0_i32_1 = arith.constant 0 : i32
    return %c0_i32, %c0_i32_0 : i32, i32
  }
  func.func @transform_6(%arg0: i32, %arg1: i32) -> (i32, i32) {
    %c0_i32 = arith.constant 0 : i32
    %c0_i32_0 = arith.constant 0 : i32
    %c0_i32_1 = arith.constant 0 : i32
    return %c0_i32, %c0_i32_0 : i32, i32
  }
  func.func @transform_7(%arg0: i32, %arg1: i32) -> (i32, i32, i32) {
    %c0_i32 = arith.constant 0 : i32
    %c0_i32_0 = arith.constant 0 : i32
    return %arg0, %c0_i32, %arg1 : i32, i32, i32
  }
}

</mosaic_0001>

<bundles_post_ra>
// kernel: tpu_custom_call.1
= control target key start
LH: loop header
LB: loop body
LE: loop exit
PB: predicated region body
PF: predicated region fallthrough
CT: control target
= control target key end

     0   :  { %12 = vsyncpa [#allocation3], 0  ;;  %s978_s0 = inlined_call_operand.vmem [shape: f32[2,4,16], index: 0, kind: input, shape index: {}]   ;;  %s979_s1 = inlined_call_operand.vmem [shape: f32[3,8,4], index: 1, kind: input, shape index: {}]   ;;  %s980_s2 = inlined_call_operand.vmem [shape: f32[8,1], index: 2, kind: input, shape index: {}]   ;;  %s981_s3 = inlined_call_operand.vmem [shape: f32[3,8,8], index: 3, kind: input, shape index: {}]   ;;  %s982_s4 = inlined_call_operand.vmem [shape: f32[8,1], index: 4, kind: input, shape index: {}]   ;;  %s983_s5 = inlined_call_operand.vmem [shape: f32[8,4], index: 5, kind: input, shape index: {}]   ;;  %s984_s6 = inlined_call_operand.vmem [shape: f32[8,1], index: 6, kind: input, shape index: {}]   ;;  %s985_s7 = inlined_call_operand.hbm [shape: f32[2,8,16], index: 7, kind: output, shape index: {}]  }
   0x1   :  { %14 = vsyncpa [#allocation3 + $0x1], 0  ;;  %s832_s24 = smov 0   ;;  %s834_s25 = smov 0  }
   0x2   :  { %s836_s26 = smov 0   ;;  %s838_s27 = smov 0  }
   0x3   :  { %s840_s28 = smov 0   ;;  %s842_s29 = smov 0  }
   0x4 LB: > { %s618_s30 = sadd.s32 4294967295, %s787_s29   ;;  %s619_s8 = sadd.s32 4294967294, %s787_s29   ;;  %s787_s29 = sphi %s842_s29, %s20_s29   ;;  %s783_s28 = sphi %s840_s28, %s992_s28   ;;  %s779_s27 = sphi %s838_s27, %s991_s27   ;;  %s775_s26 = sphi %s836_s26, %s990_s26   ;;  %s771_s25 = sphi %s834_s25, %s989_s25   ;;  %s767_s24 = sphi %s832_s24, %s988_s24  }
   0x5   : > { %s32_s9 = sadd.s32 1, %s783_s28  ;;  %s195_s10 = sadd.s32 1, %s775_s26 }
   0x6   : > { %p34_p0 = scmp.ge.s32.totalorder %s32_s9, 2  ;;  %p205_p1 = scmp.ne.s32.totalorder %s775_s26, %s771_s25 }
   0x7   : > { %p206_p2 = scmp.eq.s32.totalorder %s618_s30, 1  ;;  %p211_p3 = scmp.ne.s32.totalorder %s771_s25, %s767_s24 }
   0x8   : > { %s994_s9 = smov (%p34_p0, %s32_s9), 0  ;;  %p212_p5 = scmp.eq.s32.totalorder %s619_s8, 1 }
   0x9   : > { %p872_p4 = por %p206_p2, %p205_p1  ;;  %s190_s12 = ssub.s32 %s783_s28, %s994_s9 }
   0xa   : > { %p622_p6 = scmp.ge.s32.totalorder %s787_s29, 1  ;;  %p193_p7 = scmp.eq.s32.totalorder %s190_s12, 0 }
   0xb   : > { %p879_p8 = por %p212_p5, %p211_p3  ;;  %p258_p9 = scmp.lt.s32.totalorder %s787_s29, 3 }
   0xc   : > { %s885_s14 = scalar_select %p193_p7, %s775_s26, %s195_s10  }
   0xd   : > { %p259_p10 = pnand %p622_p6, %p258_p9 }
   0xe   : > { %p292_p11 = scmp.lt.s32.totalorder (!%p259_p10), %s779_s27, 1  ;;  %s789_s20 = smov (!%p259_p10), 4  }
   0xf   : > { %262 = sbr.rel (%p259_p10) target bundleno = 547 (0x223), region = 48  ;;  %s790_s21 = smov (!%p259_p10), 2  }
  0x10   : > { %s645_s18 = sshll.u32 (!%p259_p10), %s779_s27, 3 }
  0x11   : > { %s542_s23 = scalar_lea.hbm (!%p259_p10), %s985_s7, %s645_s18 }
  0x14   : > { %s293_s15 = scalar_select %p292_p11, %s779_s27, 1  ;;  %vm317_vm0 = vcmask 1043456   ;;  %vm304_vm1 = vcmask 31744   ;;  %v630_v1 = vld [vmem:[%s979_s1 + $0x10] sm:$0xff]  ;;  %v395_v2 = vld [vmem:[%s980_s2] sm:$0xff]  ;;  %v791_v3 = vmov 0  }
  0x15   : > { %706 = vset.pattern.permute.xlu1 %v791_v3  ;;  %708 = vset.pattern.permute.xlu0 %v791_v3  ;;  %v306_v5 = vld [vmem:[%s979_s1] sm:$0xff]  ;;  %vm310_vm2 = vcmask 15360   ;;  %v625_v8 = vld [vmem:[%s979_s1 + $0x8] sm:$0xff]  ;;  %vm415_vm3 = vcmask 64512   ;;  %v640_v19 = vld [vmem:[%s981_s3 + $0x10] sm:$0xff]  ;;  %vm528_vm6 = vcmask 130048  }
  0x16   : > { %s624_s16 = sshll.u32 %s293_s15, 2  ;;  %398 = vperm.xlu1 %706, %v395_v2   ;;  %707 = vset.pattern.permute.xlu2 %v791_v3  ;;  %v496_v18 = vld [vmem:[%s983_s5] sm:$0xff]  ;;  %vm637_vm4 = vmneg %vm304_vm1  ;;  %v633_v24 = vld [vmem:[%s981_s3 + $0x8] sm:$0xff] }
  0x17   : > { %s298_s19 = scalar_lea.vmem %s978_s0, %s624_s16  ;;  %v497_v20 = vld [vmem:[%s984_s6] sm:$0xff]  ;;  %vm634_vm5 = vmneg %vm310_vm2  ;;  %s289_s16 = sand.u32 1, %s771_s25  }
  0x18   : > { %v299_v0 = vld [vmem:[%s298_s19] sm:$0xf]  ;;  %s623_s17 = sshll.u32 %s289_s16, 3  ;;  %s531_s8 = scalar_lea.sflag [#allocation3], %s289_s16 }
  0x19   : > { %301 = vrot.lane.b32.xlu0 %v299_v0, %s789_s20  ;;  %631 = vmatpush.msk.msra.mxu2 %vm317_vm0, %v299_v0  ;;  %v488_v21 = vld [vmem:[%s982_s4] sm:$0xff]  ;;  %s291_s30 = scalar_lea.vmem [#allocation2], %s623_s17  ;;  %s729_s17 = scalar_lea.hbm %s985_s7, 16 }
  0x1a   : > { %632 = vmatmul.msk.f32.vlgmr.msra.gmra.mxu2 %vm304_vm1, %v630_v1  ;;  %v408_v22 = vld [vmem:[%s981_s3] sm:$0xff] }
  0x1b   : > { %642 = vmatpush.msk.msrb.mxu2 %vm317_vm0, %v299_v0 }
  0x21   : > { %307 = vrot.lane.b32.xlu0 %v299_v0, %s790_s21 }
  0x22   : > { %643 = vmatmul.msk.f32.vlgmr.msrb.gmra.mxu2 %vm304_vm1, %v496_v18 }
  0x29   : > { %500 = vperm.xlu0 %708, %v497_v20  }
  0x88   : > { %v399_v14 = vpop.permute.xlu1 %398 }
  0x8b   : > { %v302_v4 = vpop.permute.xlu0 %301 }
  0x8c   : > { %v305_v6 = vsel %vm304_vm1, 0.0, %v302_v4 }
  0x8d   : > { %628 = vmatpush.msk.msra.mxu1 %vm317_vm0, %v305_v6 }
  0x8e   : > { %629 = vmatmul.msk.f32.vlgmr.msra.gmra.mxu1 %vm304_vm1, %v306_v5 }
  0x93   : > { %v308_v7 = vpop.permute.xlu0 %307 }
  0x94   : > { %v311_v9 = vsel %vm310_vm2, 0.0, %v308_v7 }
  0x95   : > { %626 = vmatpush.msk.msra.mxu0 %vm317_vm0, %v311_v9 }
  0x96   : > { %627 = vmatmul.msk.f32.vlgmr.msra.gmra.mxu0 %vm304_vm1, %v625_v8 }
  0x9b   : > { %v501_v31 = vpop.permute.xlu0 %500 }
  0x9d   : > { %v391_v12 = vpop.f32.mrf.mxu2 }
  0xa5   : > { %v523_v32 = vpop.f32.mrf.mxu2 }
  0xa6   : > { %v524_v35 = vadd.f32 %v523_v32, %v501_v31 }
 0x10b   : > { %v364_v10 = vpop.f32.mrf.mxu1 }
 0x113   : > { %v338_v11 = vpop.f32.mrf.mxu0 }
 0x114   : > { %v365_v13 = vadd.f32 %v364_v10, %v338_v11 }
 0x116   : > { %v394_v15 = vadd.f32 %v391_v12, %v365_v13 }
 0x118   : > { %v401_v16 = vadd.f32 %v399_v14, %v394_v15 }
 0x11a   : > { %v402_v17 = vmax.f32 %v401_v16, 0.0 }
 0x11c   : > { %404 = vrot.lane.b32.xlu2 %v402_v17, %s789_s20  ;;  %409 = vrot.lane.b32.xlu1 %v402_v17, %s790_s21  ;;  %s544_s20 = sshll.u32 %s291_s30, 4  ;;  %s546_s21 = sshll.u32 %s542_s23, 4  ;;  %s545_s20 = int_to_ptr.vmem [resolvable:$true] %s544_s20  ;;  %s547_s21 = int_to_ptr.hbm [resolvable:$true] %s546_s21 }
 0x11d   : > { %482 = vmatpush.msrb.mxu1 %v402_v17  ;;  %s723_s27 = sshra.s32 %s547_s21, 4  ;;  %s724_s27 = int_to_ptr.hbm [resolvable:$true] %s723_s27 }
 0x11e   : > { %641 = vmatmul.msk.f32.vlgmr.msrb.gmra.mxu1 %vm415_vm3, %v640_v19  ;;  %s725_s10 = scalar_lea.hbm %s724_s27, 8  ;;  %p730_p1 = scmp.lt.s32.totalorder %s724_s27, %s985_s7 }
 0x11f   : > { %p726_p12 = scmp.ne.s32.totalorder %s724_s27, %s725_s10  ;;  %p731_p2 = scmp.lt.s32.totalorder %s729_s17, %s725_s10 }
 0x121   : > { %p727_p13 = pnand %p726_p12, %p872_p4  ;;  %p732_p3 = por %p731_p2, %p730_p1 }
 0x123   : > { %p728_p0 = pneg %p727_p13 }
 0x124   : > { %491 = vperm.xlu2 %707, %v488_v21  }
 0x125   : > { %p733_p5 = pnand %p732_p3, %p728_p0 }
 0x176   : > { %v405_v23 = vpop.permute.xlu2 %404 }
 0x177   : > { %638 = vmatpush.msk.msrb.mxu0 %vm637_vm4, %v405_v23 }
 0x178   : > { %639 = vmatmul.msk.f32.vlgmr.msrb.gmra.mxu0 %vm415_vm3, %v408_v22 }
 0x17e   : > { %v492_v30 = vpop.permute.xlu2 %491 }
 0x18e   : > { %v410_v25 = vpop.permute.xlu1 %409 }
 0x18f   : > { %635 = vmatpush.msk.msra.mxu3 %vm634_vm5, %v410_v25 }
 0x190   : > { %636 = vmatmul.msk.f32.vlgmr.msra.gmra.mxu3 %vm415_vm3, %v633_v24 }
 0x19b   : > { %v484_v28 = vpop.f32.mrf.mxu1 }
 0x1f5   : > { %v459_v26 = vpop.f32.mrf.mxu0 }
 0x213   : > { %v436_v27 = vpop.f32.mrf.mxu3 }
 0x214   : > { %v460_v29 = vadd.f32 %v459_v26, %v436_v27 }
 0x216   : > { %v487_v33 = vadd.f32 %v484_v28, %v460_v29 }
 0x218   : > { %v494_v34 = vadd.f32 %v492_v30, %v487_v33 }
 0x21a   : > { %v495_v36 = vmax.f32 %v494_v34, 0.0 }
 0x21c   : > { %v526_v37 = vadd.f32 %v524_v35, %v495_v36 }
 0x21e   : > { %v527_v38 = vmax.f32 %v526_v37, 0.0 }
 0x220   : > { %529 = vst.msk [vmem:[%s291_s30] sm:$0xff] %vm528_vm6, %v527_v38 }
 0x221   : > { %736 = shalt.err (!%p733_p5)
}
 0x222   : > { %648 = dma.vmem_to_hbm [thread:$0]  (%p872_p4), %s545_s20, 128, %s547_s21, %s531_s8  }
 0x223 PF: > { %p654_p6 = scmp.ge.s32.totalorder %s787_s29, 2  ;;  %s558_s16 = sand.u32 1, %s767_s24  }
 0x224   : > { %s559_s22 = scalar_lea.sflag [#allocation3], %s558_s16 }
 0x225   : > { %p651_p7 = pnand %p654_p6, %p879_p8 }
 0x227   : > { %p652_p9 = pneg %p651_p7 }
 0x229   : > { %762 = dma.done.wait (%p652_p9), %s559_s22, 128  }
 0x22a   : > { %764 = vsyncadd (%p652_p9), %s559_s22, 4294967168  ;;  %s20_s29 = sadd.s32 1, %s787_s29   ;;  %s988_s24 = smov %s771_s25 }
 0x22b   : > { %p17_p10 = scmp.ge.s32.totalorder %s20_s29, 4   ;;  %s989_s25 = smov %s775_s26 }
 0x22c   : > { %s990_s26 = smov %s885_s14  ;;  %s991_s27 = smov %s783_s28 }
 0x22d   : > { %s992_s28 = smov %s994_s9  ;;  %19 = sbr.rel (!%p17_p10) target bundleno = 4 (0x4), region = 87 }
 0x232   :  { %565 = vsyncpa [#allocation3], 1 }
 0x233   :  { %567 = vsyncpa [#allocation3 + $0x1], 1 }

</bundles_post_ra>
